<compile_context>
chip_gen: v6e
topology: v6e:2x2x1
jax: 0.10.0
libtpu: 0.0.40
codegen_flags: <defaults>
</compile_context>

<pallas_src>
import jax
import jax.numpy as jnp
from jax.experimental import pallas as pl
from jax.experimental.pallas import tpu as pltpu


def _pairs(student_num_crops, teacher_num_crops, swapped_assignment):
    """Enumerate (iq, v) pairs exactly as the PyTorch double loop does."""
    pairs = []
    for iq in range(teacher_num_crops):
        for v in range(student_num_crops):
            if swapped_assignment:
                if v == iq:
                    continue
            elif v < teacher_num_crops and v != iq:
                continue
            pairs.append((iq, v))
    return pairs


def _generation_vmem_limit_bytes():
    """Pick a scoped-VMEM limit appropriate for the TPU generation."""
    cap = None
    try:
        cap = pltpu.get_tpu_info().vmem_capacity_bytes
    except Exception:
        cap = None
    if cap is None:
        cap = 64 * 1024 * 1024            # conservative default (v7x-sized)
    if cap >= 96 * 1024 * 1024:           # v5e / v6e: 128 MiB physical VMEM
        return 64 * 1024 * 1024
    return 40 * 1024 * 1024               # v7x: 64 MiB per TensorCore


def _per_row_bytes(k, teacher_crops, in_bytes):
    """Approx per-row VMEM footprint of one grid step.

    2 inputs x 2 pipeline buffers + teacher et cache + ~3 f32 elementwise temporaries.
    """
    return k * (4 * in_bytes + 4 * teacher_crops + 12)


def _pick_row_tile(batch, k, teacher_crops, in_bytes, budget_bytes):
    """Largest row tile whose per-step footprint fits the budget.

    Returns `batch` when the full per-crop batch fits; otherwise the largest
    multiple-of-8 divisor of `batch` within budget (sublane constraint), falling
    back to the smallest multiple-of-8 divisor, then to `batch` (full-dim block).
    """
    per_row = _per_row_bytes(k, teacher_crops, in_bytes)
    tb_max = max(budget_bytes // per_row, 1)
    if batch <= tb_max:
        return batch
    tb_max = (tb_max // 8) * 8
    best = None
    for cand in range(8, batch, 8):
        if batch % cand == 0 and cand <= tb_max:
            best = cand
    if best is not None:
        return best
    for cand in range(8, batch, 8):       # smallest legal divisor (may exceed budget)
        if batch % cand == 0:
            return cand
    return batch                          # full-dim block is always legal


def make_dino_distillation_loss(teacher_temperature: float,
                                student_temperature: float,
                                student_num_crops: int,
                                teacher_num_crops: int,
                                swapped_assignment: bool,
                                row_tile: int | None = None):
    pairs = _pairs(student_num_crops, teacher_num_crops, swapped_assignment)
    n_terms = len(pairs)
    assert n_terms > 0, "configuration yields zero loss terms"

    # Python floats / ints -> compile-time literals (no captured jnp constants).
    inv_tt = float(1.0 / teacher_temperature)
    inv_st = float(1.0 / student_temperature)
    tc = int(teacher_num_crops)
    sc = int(student_num_crops)
    n_phases = tc + sc

    def loss_fn(student_scores, teacher_scores):
        total_s, K = student_scores.shape
        total_t, Kt = teacher_scores.shape
        assert K == Kt
        assert total_s % sc == 0 and total_t % tc == 0
        B = total_s // sc
        assert total_t // tc == B

        in_bytes = jnp.dtype(student_scores.dtype).itemsize
        vmem_limit = _generation_vmem_limit_bytes()
        budget = int(vmem_limit * 0.85)
        TB = row_tile if row_tile is not None else _pick_row_tile(B, K, tc, in_bytes, budget)
        assert B % TB == 0, "row tile must divide per-crop batch"
        assert TB == B or TB % 8 == 0, "row tile must be a multiple of 8 (or the full batch)"
        R = B // TB
        footprint = _per_row_bytes(K, tc, in_bytes) * TB
        vmem_limit = max(vmem_limit, footprint + 4 * 1024 * 1024)
        scale = float(1.0 / (B * n_terms))      # folds mean-over-rows and /n_terms

        # (num_crops, B, K) so index maps are simply (crop, row_tile, 0).
        s3 = student_scores.reshape(sc, B, K)
        t3 = teacher_scores.reshape(tc, B, K)

        def kernel(t_ref, s_ref, o_ref, q_cache, q_inv, acc_ref):
            p = pl.program_id(1)                 # phase index (inner, sequential)

            @pl.when(p == 0)
            def _init():
                acc_ref[...] = jnp.zeros_like(acc_ref)

            # ---- teacher phases: cache unnormalized exp((t - max)/Tt) + per-row 1/sum.
            for iq in range(tc):
                @pl.when(p == iq)
                def _teacher(iq=iq):
                    t = t_ref[0].astype(jnp.float32)
                    m = jnp.max(t, axis=-1, keepdims=True)
                    et = jnp.exp((t - m) * inv_tt)
                    q_cache[iq] = et
                    q_inv[iq] = 1.0 / jnp.sum(et, axis=-1, keepdims=True)   # (TB,1)

            # ---- student phases: one lse per student crop, cross terms per paired teacher.
            @pl.when(p >= tc)
            def _student():
                v = p - tc
                s = s_ref[0].astype(jnp.float32)
                m = jnp.max(s, axis=-1, keepdims=True)
                lse = (jnp.log(jnp.sum(jnp.exp((s - m) * inv_st),
                                       axis=-1, keepdims=True))
                       + m * inv_st)                                         # (TB,1)
                for iq in range(tc):
                    if swapped_assignment:
                        applies = v != iq
                    else:
                        applies = jnp.logical_or(v >= tc, v == iq)

                    @pl.when(applies)
                    def _pair(iq=iq):
                        cross = jnp.sum(q_cache[iq] * s, axis=-1, keepdims=True)  # (TB,1)
                        acc_ref[...] += lse - inv_st * (q_inv[iq] * cross)

            # ---- finalize this row tile: one sublane reduce + lane-dense store.
            @pl.when(p == n_phases - 1)
            def _finalize():
                o_ref[...] = jnp.sum(acc_ref[...]) * jnp.ones((1, 8, 128), jnp.float32)

        out = pl.pallas_call(
            kernel,
            out_shape=jax.ShapeDtypeStruct((R, 8, 128), jnp.float32),
            grid_spec=pltpu.PrefetchScalarGridSpec(
                num_scalar_prefetch=0,
                grid=(R, n_phases),
                in_specs=[
                    # teacher crop block: crop p during teacher phases, then held
                    # resident (no re-DMA) during student phases.
                    pl.BlockSpec((1, TB, K),
                                 lambda r, p: (jnp.minimum(p, tc - 1), r, 0)),
                    # student crop block: crop 0 prefetched during teacher phases,
                    # then one new block per student phase.
                    pl.BlockSpec((1, TB, K),
                                 lambda r, p: (jnp.maximum(p - tc, 0), r, 0)),
                ],
                out_specs=pl.BlockSpec((1, 8, 128), lambda r, p: (r, 0, 0)),
                scratch_shapes=[
                    pltpu.VMEM((tc, TB, K), jnp.float32),   # cached teacher exp (unnormalized)
                    pltpu.VMEM((tc, TB, 1), jnp.float32),   # per-row inverse softmax sums
                    pltpu.VMEM((TB, 1), jnp.float32),       # per-row-tile loss accumulator
                ],
            ),
            compiler_params=pltpu.CompilerParams(
                # Row-tile axis carries no cross-iteration state -> megacore-parallel
                # on v7x; the phase axis is sequential (teacher cache + accumulator).
                dimension_semantics=("parallel", "arbitrary"),
                vmem_limit_bytes=int(vmem_limit),
            ),
        )(t3, s3)

        # Sum the R per-row-tile partials (each broadcast over its (8,128) block).
        return jnp.sum(out[:, 0, 0]) * scale

    return loss_fn


def dino_loss_reference(student_scores, teacher_scores, teacher_temperature,
                        student_temperature, student_num_crops,
                        teacher_num_crops, swapped_assignment):
    """Pure-JAX reference replicating the PyTorch forward."""
    student_out = jnp.split(student_scores / student_temperature,
                            student_num_crops, axis=0)
    teacher_out = jnp.split(
        jax.nn.softmax(teacher_scores / teacher_temperature, axis=-1),
        teacher_num_crops, axis=0)
    total = 0.0
    n = 0
    for iq, q in enumerate(teacher_out):
        for v in range(len(student_out)):
            if swapped_assignment:
                if v == iq:
                    continue
            elif v < teacher_num_crops and v != iq:
                continue
            logp = jax.nn.log_softmax(student_out[v], axis=-1)
            total += jnp.mean(jnp.sum(-q * logp, axis=-1))
            n += 1
    return total / n


if __name__ == "__main__":
    teacher_temperature = 0.07
    student_temperature = 0.1
    student_num_crops = 4
    teacher_num_crops = 2

    B = 16     # per-crop batch
    K = 128    # number of prototypes / output dim

    key = jax.random.PRNGKey(0)
    k1, k2 = jax.random.split(key)
    student_scores = jax.random.normal(
        k1, (student_num_crops * B, K), dtype=jnp.float32)
    teacher_scores = jax.random.normal(
        k2, (teacher_num_crops * B, K), dtype=jnp.float32)

    # Exercise both assignment modes with an explicit row tile (R=2 row tiles,
    # exercising the parallel row-tile axis and per-tile partial outputs).
    for swapped in (True, False):
        loss_fn = make_dino_distillation_loss(
            teacher_temperature, student_temperature,
            student_num_crops, teacher_num_crops, swapped, row_tile=8)
        loss = jax.block_until_ready(loss_fn(student_scores, teacher_scores))
        ref = jax.block_until_ready(dino_loss_reference(
            student_scores, teacher_scores, teacher_temperature,
            student_temperature, student_num_crops, teacher_num_crops, swapped))
        assert jnp.allclose(loss, ref, rtol=1e-5, atol=1e-5), (swapped, loss, ref)

    # Also run with automatic (generation-aware) row-tile sizing.
    loss_fn = make_dino_distillation_loss(
        teacher_temperature, student_temperature,
        student_num_crops, teacher_num_crops, True)
    loss = jax.block_until_ready(loss_fn(student_scores, teacher_scores))
    ref = jax.block_until_ready(dino_loss_reference(
        student_scores, teacher_scores, teacher_temperature,
        student_temperature, student_num_crops, teacher_num_crops, True))
    assert jnp.allclose(loss, ref, rtol=1e-5, atol=1e-5), (loss, ref)

    print("KERNEL_OK")
</pallas_src>

<mosaic_0001>
module attributes {stable_mosaic.version = 11 : i64} {
  func.func @kernel(%arg0: i32, %arg1: i32, %arg2: memref<1x8x128xf32, #tpu.memory_space<vmem>>, %arg3: memref<1x8x128xf32, #tpu.memory_space<vmem>>, %arg4: memref<1x8x128xf32, #tpu.memory_space<vmem>>, %arg5: memref<2x8x128xf32, #tpu.memory_space<vmem>>, %arg6: memref<2x8x1xf32, #tpu.memory_space<vmem>>, %arg7: memref<8x1xf32, #tpu.memory_space<vmem>>) attributes {dimension_semantics = [#tpu.dimension_semantics<parallel>, #tpu.dimension_semantics<arbitrary>], iteration_bounds = array<i64: 2, 6>, scalar_prefetch = 0 : i64, scratch_operands = 3 : i64, tpu.core_type = #tpu.core_type<tc>, window_params = [{transform_indices = @transform_0, window_bounds = array<i64: 1, 8, 128>}, {transform_indices = @transform_1, window_bounds = array<i64: 1, 8, 128>}, {transform_indices = @transform_2, window_bounds = array<i64: 1, 8, 128>}]} {
    %c0_i32 = arith.constant 0 : i32
    %0 = arith.cmpi eq, %arg1, %c0_i32 : i32
    %1 = arith.extui %0 : i1 to i32
    %c0_i32_0 = arith.constant 0 : i32
    %2 = arith.cmpi ne, %1, %c0_i32_0 : i32
    scf.if %2 {
      %cst = arith.constant 0.000000e+00 : f32
      %15 = vector.broadcast %cst : f32 to vector<8x1xf32>
      %c0 = arith.constant 0 : index
      %c0_6 = arith.constant 0 : index
      %16 = vector.load %arg7[%c0, %c0_6] : memref<8x1xf32, #tpu.memory_space<vmem>>, vector<8x1xf32>
      tpu.vector_store %arg7[%c0, %c0_6], %15 {strides = array<i32>} : memref<8x1xf32, #tpu.memory_space<vmem>>, vector<8x1xf32>,
    } else {
    }
    %c0_i32_1 = arith.constant 0 : i32
    %3 = arith.cmpi eq, %arg1, %c0_i32_1 : i32
    %4 = arith.extui %3 : i1 to i32
    %c0_i32_2 = arith.constant 0 : i32
    %5 = arith.cmpi ne, %4, %c0_i32_2 : i32
    scf.if %5 {
      %c0 = arith.constant 0 : index
      %c0_6 = arith.constant 0 : index
      %c0_7 = arith.constant 0 : index
      %15 = vector.load %arg2[%c0, %c0_6, %c0_7] : memref<1x8x128xf32, #tpu.memory_space<vmem>>, vector<1x8x128xf32>
      %16 = vector.shape_cast %15 : vector<1x8x128xf32> to vector<8x128xf32>
      %cst = arith.constant dense<0xFF800000> : vector<8xf32>
      %17 = vector.multi_reduction <maximumf>, %16, %cst [1] : vector<8x128xf32> to vector<8xf32>
      %18 = vector.shape_cast %17 : vector<8xf32> to vector<8x1xf32>
      %19 = vector.broadcast %18 : vector<8x1xf32> to vector<8x128xf32>
      %20 = arith.subf %16, %19 : vector<8x128xf32>
      %cst_8 = arith.constant 14.2857141 : f32
      %21 = vector.broadcast %cst_8 : f32 to vector<8x128xf32>
      %22 = arith.mulf %20, %21 : vector<8x128xf32>
      %23 = math.exp %22 : vector<8x128xf32>
      %c0_9 = arith.constant 0 : index
      %c0_10 = arith.constant 0 : index
      %c0_11 = arith.constant 0 : index
      %24 = vector.load %arg5[%c0_9, %c0_10, %c0_11] : memref<2x8x128xf32, #tpu.memory_space<vmem>>, vector<1x8x128xf32>
      %25 = vector.shape_cast %24 : vector<1x8x128xf32> to vector<8x128xf32>
      %26 = vector.shape_cast %23 : vector<8x128xf32> to vector<1x8x128xf32>
      tpu.vector_store %arg5[%c0_9, %c0_10, %c0_11], %26 {strides = array<i32>} : memref<2x8x128xf32, #tpu.memory_space<vmem>>, vector<1x8x128xf32>,
      %cst_12 = arith.constant dense<0.000000e+00> : vector<8xf32>
      %27 = vector.multi_reduction <add>, %23, %cst_12 [1] : vector<8x128xf32> to vector<8xf32>
      %28 = vector.shape_cast %27 : vector<8xf32> to vector<8x1xf32>
      %cst_13 = arith.constant 1.000000e+00 : f32
      %29 = vector.broadcast %cst_13 : f32 to vector<8x1xf32>
      %30 = arith.divf %29, %28 : vector<8x1xf32>
      %c0_14 = arith.constant 0 : index
      %c0_15 = arith.constant 0 : index
      %c0_16 = arith.constant 0 : index
      %31 = vector.load %arg6[%c0_14, %c0_15, %c0_16] : memref<2x8x1xf32, #tpu.memory_space<vmem>>, vector<1x8x1xf32>
      %32 = vector.shape_cast %31 : vector<1x8x1xf32> to vector<8x1xf32>
      %33 = vector.shape_cast %30 : vector<8x1xf32> to vector<1x8x1xf32>
      tpu.vector_store %arg6[%c0_14, %c0_15, %c0_16], %33 {strides = array<i32>} : memref<2x8x1xf32, #tpu.memory_space<vmem>>, vector<1x8x1xf32>,
    } else {
    }
    %c1_i32 = arith.constant 1 : i32
    %6 = arith.cmpi eq, %arg1, %c1_i32 : i32
    %7 = arith.extui %6 : i1 to i32
    %c0_i32_3 = arith.constant 0 : i32
    %8 = arith.cmpi ne, %7, %c0_i32_3 : i32
    scf.if %8 {
      %c0 = arith.constant 0 : index
      %c0_6 = arith.constant 0 : index
      %c0_7 = arith.constant 0 : index
      %15 = vector.load %arg2[%c0, %c0_6, %c0_7] : memref<1x8x128xf32, #tpu.memory_space<vmem>>, vector<1x8x128xf32>
      %16 = vector.shape_cast %15 : vector<1x8x128xf32> to vector<8x128xf32>
      %cst = arith.constant dense<0xFF800000> : vector<8xf32>
      %17 = vector.multi_reduction <maximumf>, %16, %cst [1] : vector<8x128xf32> to vector<8xf32>
      %18 = vector.shape_cast %17 : vector<8xf32> to vector<8x1xf32>
      %19 = vector.broadcast %18 : vector<8x1xf32> to vector<8x128xf32>
      %20 = arith.subf %16, %19 : vector<8x128xf32>
      %cst_8 = arith.constant 14.2857141 : f32
      %21 = vector.broadcast %cst_8 : f32 to vector<8x128xf32>
      %22 = arith.mulf %20, %21 : vector<8x128xf32>
      %23 = math.exp %22 : vector<8x128xf32>
      %c1 = arith.constant 1 : index
      %c0_9 = arith.constant 0 : index
      %c0_10 = arith.constant 0 : index
      %24 = vector.load %arg5[%c1, %c0_9, %c0_10] : memref<2x8x128xf32, #tpu.memory_space<vmem>>, vector<1x8x128xf32>
      %25 = vector.shape_cast %24 : vector<1x8x128xf32> to vector<8x128xf32>
      %26 = vector.shape_cast %23 : vector<8x128xf32> to vector<1x8x128xf32>
      tpu.vector_store %arg5[%c1, %c0_9, %c0_10], %26 {strides = array<i32>} : memref<2x8x128xf32, #tpu.memory_space<vmem>>, vector<1x8x128xf32>,
      %cst_11 = arith.constant dense<0.000000e+00> : vector<8xf32>
      %27 = vector.multi_reduction <add>, %23, %cst_11 [1] : vector<8x128xf32> to vector<8xf32>
      %28 = vector.shape_cast %27 : vector<8xf32> to vector<8x1xf32>
      %cst_12 = arith.constant 1.000000e+00 : f32
      %29 = vector.broadcast %cst_12 : f32 to vector<8x1xf32>
      %30 = arith.divf %29, %28 : vector<8x1xf32>
      %c1_13 = arith.constant 1 : index
      %c0_14 = arith.constant 0 : index
      %c0_15 = arith.constant 0 : index
      %31 = vector.load %arg6[%c1_13, %c0_14, %c0_15] : memref<2x8x1xf32, #tpu.memory_space<vmem>>, vector<1x8x1xf32>
      %32 = vector.shape_cast %31 : vector<1x8x1xf32> to vector<8x1xf32>
      %33 = vector.shape_cast %30 : vector<8x1xf32> to vector<1x8x1xf32>
      tpu.vector_store %arg6[%c1_13, %c0_14, %c0_15], %33 {strides = array<i32>} : memref<2x8x1xf32, #tpu.memory_space<vmem>>, vector<1x8x1xf32>,
    } else {
    }
    %c2_i32 = arith.constant 2 : i32
    %9 = arith.cmpi sge, %arg1, %c2_i32 : i32
    %10 = arith.extui %9 : i1 to i32
    %c0_i32_4 = arith.constant 0 : i32
    %11 = arith.cmpi ne, %10, %c0_i32_4 : i32
    scf.if %11 {
      %c2_i32_6 = arith.constant 2 : i32
      %15 = arith.subi %arg1, %c2_i32_6 : i32
      %c0 = arith.constant 0 : index
      %c0_7 = arith.constant 0 : index
      %c0_8 = arith.constant 0 : index
      %16 = vector.load %arg3[%c0, %c0_7, %c0_8] : memref<1x8x128xf32, #tpu.memory_space<vmem>>, vector<1x8x128xf32>
      %17 = vector.shape_cast %16 : vector<1x8x128xf32> to vector<8x128xf32>
      %cst = arith.constant dense<0xFF800000> : vector<8xf32>
      %18 = vector.multi_reduction <maximumf>, %17, %cst [1] : vector<8x128xf32> to vector<8xf32>
      %19 = vector.shape_cast %18 : vector<8xf32> to vector<8x1xf32>
      %20 = vector.broadcast %19 : vector<8x1xf32> to vector<8x128xf32>
      %21 = arith.subf %17, %20 : vector<8x128xf32>
      %cst_9 = arith.constant 1.000000e+01 : f32
      %22 = vector.broadcast %cst_9 : f32 to vector<8x128xf32>
      %23 = arith.mulf %21, %22 : vector<8x128xf32>
      %24 = math.exp %23 : vector<8x128xf32>
      %cst_10 = arith.constant dense<0.000000e+00> : vector<8xf32>
      %25 = vector.multi_reduction <add>, %24, %cst_10 [1] : vector<8x128xf32> to vector<8xf32>
      %26 = vector.shape_cast %25 : vector<8xf32> to vector<8x1xf32>
      %27 = math.log %26 : vector<8x1xf32>
      %cst_11 = arith.constant 1.000000e+01 : f32
      %28 = vector.broadcast %cst_11 : f32 to vector<8x1xf32>
      %29 = arith.mulf %19, %28 : vector<8x1xf32>
      %30 = arith.addf %27, %29 : vector<8x1xf32>
      %c0_i32_12 = arith.constant 0 : i32
      %31 = arith.cmpi ne, %15, %c0_i32_12 : i32
      %32 = arith.extui %31 : i1 to i32
      %c0_i32_13 = arith.constant 0 : i32
      %33 = arith.cmpi ne, %32, %c0_i32_13 : i32
      scf.if %33 {
        %c0_16 = arith.constant 0 : index
        %c0_17 = arith.constant 0 : index
        %c0_18 = arith.constant 0 : index
        %37 = vector.load %arg5[%c0_16, %c0_17, %c0_18] : memref<2x8x128xf32, #tpu.memory_space<vmem>>, vector<1x8x128xf32>
        %38 = vector.shape_cast %37 : vector<1x8x128xf32> to vector<8x128xf32>
        %39 = arith.mulf %38, %17 : vector<8x128xf32>
        %cst_19 = arith.constant dense<0.000000e+00> : vector<8xf32>
        %40 = vector.multi_reduction <add>, %39, %cst_19 [1] : vector<8x128xf32> to vector<8xf32>
        %41 = vector.shape_cast %40 : vector<8xf32> to vector<8x1xf32>
        %c0_20 = arith.constant 0 : index
        %c0_21 = arith.constant 0 : index
        %42 = vector.load %arg7[%c0_20, %c0_21] : memref<8x1xf32, #tpu.memory_space<vmem>>, vector<8x1xf32>
        %c0_22 = arith.constant 0 : index
        %c0_23 = arith.constant 0 : index
        %c0_24 = arith.constant 0 : index
        %43 = vector.load %arg6[%c0_22, %c0_23, %c0_24] : memref<2x8x1xf32, #tpu.memory_space<vmem>>, vector<1x8x1xf32>
        %44 = vector.shape_cast %43 : vector<1x8x1xf32> to vector<8x1xf32>
        %45 = arith.mulf %44, %41 : vector<8x1xf32>
        %cst_25 = arith.constant 1.000000e+01 : f32
        %46 = vector.broadcast %cst_25 : f32 to vector<8x1xf32>
        %47 = arith.mulf %46, %45 : vector<8x1xf32>
        %48 = arith.subf %30, %47 : vector<8x1xf32>
        %49 = arith.addf %42, %48 : vector<8x1xf32>
        %c0_26 = arith.constant 0 : index
        %c0_27 = arith.constant 0 : index
        %50 = vector.load %arg7[%c0_26, %c0_27] : memref<8x1xf32, #tpu.memory_space<vmem>>, vector<8x1xf32>
        tpu.vector_store %arg7[%c0_26, %c0_27], %49 {strides = array<i32>} : memref<8x1xf32, #tpu.memory_space<vmem>>, vector<8x1xf32>,
      } else {
      }
      %c1_i32_14 = arith.constant 1 : i32
      %34 = arith.cmpi ne, %15, %c1_i32_14 : i32
      %35 = arith.extui %34 : i1 to i32
      %c0_i32_15 = arith.constant 0 : i32
      %36 = arith.cmpi ne, %35, %c0_i32_15 : i32
      scf.if %36 {
        %c1 = arith.constant 1 : index
        %c0_16 = arith.constant 0 : index
        %c0_17 = arith.constant 0 : index
        %37 = vector.load %arg5[%c1, %c0_16, %c0_17] : memref<2x8x128xf32, #tpu.memory_space<vmem>>, vector<1x8x128xf32>
        %38 = vector.shape_cast %37 : vector<1x8x128xf32> to vector<8x128xf32>
        %39 = arith.mulf %38, %17 : vector<8x128xf32>
        %cst_18 = arith.constant dense<0.000000e+00> : vector<8xf32>
        %40 = vector.multi_reduction <add>, %39, %cst_18 [1] : vector<8x128xf32> to vector<8xf32>
        %41 = vector.shape_cast %40 : vector<8xf32> to vector<8x1xf32>
        %c0_19 = arith.constant 0 : index
        %c0_20 = arith.constant 0 : index
        %42 = vector.load %arg7[%c0_19, %c0_20] : memref<8x1xf32, #tpu.memory_space<vmem>>, vector<8x1xf32>
        %c1_21 = arith.constant 1 : index
        %c0_22 = arith.constant 0 : index
        %c0_23 = arith.constant 0 : index
        %43 = vector.load %arg6[%c1_21, %c0_22, %c0_23] : memref<2x8x1xf32, #tpu.memory_space<vmem>>, vector<1x8x1xf32>
        %44 = vector.shape_cast %43 : vector<1x8x1xf32> to vector<8x1xf32>
        %45 = arith.mulf %44, %41 : vector<8x1xf32>
        %cst_24 = arith.constant 1.000000e+01 : f32
        %46 = vector.broadcast %cst_24 : f32 to vector<8x1xf32>
        %47 = arith.mulf %46, %45 : vector<8x1xf32>
        %48 = arith.subf %30, %47 : vector<8x1xf32>
        %49 = arith.addf %42, %48 : vector<8x1xf32>
        %c0_25 = arith.constant 0 : index
        %c0_26 = arith.constant 0 : index
        %50 = vector.load %arg7[%c0_25, %c0_26] : memref<8x1xf32, #tpu.memory_space<vmem>>, vector<8x1xf32>
        tpu.vector_store %arg7[%c0_25, %c0_26], %49 {strides = array<i32>} : memref<8x1xf32, #tpu.memory_space<vmem>>, vector<8x1xf32>,
      } else {
      }
    } else {
    }
    %c5_i32 = arith.constant 5 : i32
    %12 = arith.cmpi eq, %arg1, %c5_i32 : i32
    %13 = arith.extui %12 : i1 to i32
    %c0_i32_5 = arith.constant 0 : i32
    %14 = arith.cmpi ne, %13, %c0_i32_5 : i32
    scf.if %14 {
      %c0 = arith.constant 0 : index
      %c0_6 = arith.constant 0 : index
      %15 = vector.load %arg7[%c0, %c0_6] : memref<8x1xf32, #tpu.memory_space<vmem>>, vector<8x1xf32>
      %16 = vector.shape_cast %15 : vector<8x1xf32> to vector<1x8x1xf32>
      %cst = arith.constant dense<0.000000e+00> : vector<1xf32>
      %17 = vector.multi_reduction <add>, %16, %cst [1, 2] : vector<1x8x1xf32> to vector<1xf32>
      %18 = vector.shape_cast %17 : vector<1xf32> to vector<1x1x1xf32>
      %19 = vector.extract %18[0, 0, 0] : f32 from vector<1x1x1xf32>
      %cst_7 = arith.constant 1.000000e+00 : f32
      %20 = vector.broadcast %cst_7 : f32 to vector<1x8x128xf32>
      %21 = vector.broadcast %19 : f32 to vector<1x8x128xf32>
      %22 = arith.mulf %21, %20 : vector<1x8x128xf32>
      %c0_8 = arith.constant 0 : index
      %c0_9 = arith.constant 0 : index
      %c0_10 = arith.constant 0 : index
      %23 = vector.load %arg4[%c0_8, %c0_9, %c0_10] : memref<1x8x128xf32, #tpu.memory_space<vmem>>, vector<1x8x128xf32>
      tpu.vector_store %arg4[%c0_8, %c0_9, %c0_10], %22 {strides = array<i32>} : memref<1x8x128xf32, #tpu.memory_space<vmem>>, vector<1x8x128xf32>,
    } else {
    }
    return
  }
  func.func @transform_0(%arg0: i32, %arg1: i32) -> (i32, i32, i32) {
    %c1_i32 = arith.constant 1 : i32
    %0 = arith.minsi %arg1, %c1_i32 : i32
    %c0_i32 = arith.constant 0 : i32
    %c0_i32_0 = arith.constant 0 : i32
    return %0, %arg0, %c0_i32 : i32, i32, i32
  }
  func.func @transform_1(%arg0: i32, %arg1: i32) -> (i32, i32, i32) {
    %c2_i32 = arith.constant 2 : i32
    %0 = arith.subi %arg1, %c2_i32 : i32
    %c0_i32 = arith.constant 0 : i32
    %1 = arith.maxsi %0, %c0_i32 : i32
    %c0_i32_0 = arith.constant 0 : i32
    %c0_i32_1 = arith.constant 0 : i32
    return %1, %arg0, %c0_i32_0 : i32, i32, i32
  }
  func.func @transform_2(%arg0: i32, %arg1: i32) -> (i32, i32, i32) {
    %c0_i32 = arith.constant 0 : i32
    %c0_i32_0 = arith.constant 0 : i32
    %c0_i32_1 = arith.constant 0 : i32
    return %arg0, %c0_i32, %c0_i32_0 : i32, i32, i32
  }
}

</mosaic_0001>

<bundles_post_ra>
// kernel: tpu_custom_call.1
= control target key start
LH: loop header
LB: loop body
LE: loop exit
PB: predicated region body
PF: predicated region fallthrough
CT: control target
= control target key end

     0   :  { %s1177_s0 = inlined_call_operand.hbm [shape: f32[2,16,128], index: 0, kind: input, shape index: {}]   ;;  %s1178_s1 = inlined_call_operand.hbm [shape: f32[4,16,128], index: 1, kind: input, shape index: {}]   ;;  %s1179_s2 = inlined_call_operand.hbm [shape: f32[2,8,128], index: 2, kind: output, shape index: {}]  }
   0x1   :  { %1190 = sst [smem:[#allocation21_spill]] %s1177_s0 }
   0x2   :  { %1191 = sst [smem:[#allocation22_spill]] %s1179_s2 }
   0x3   :  { %7 = vsyncpa [#allocation6], 0 }
   0x4   :  { %9 = vsyncpa [#allocation6 + $0x1], 0 }
   0x5   :  { %10 = vsyncpa [#allocation9], 0 }
   0x6   :  { %12 = vsyncpa [#allocation9 + $0x1], 0 }
   0x7   :  { %13 = vsyncpa [#allocation7], 0 }
   0x8   :  { %15 = vsyncpa [#allocation7 + $0x1], 0  ;;  %s866_s9 = smov 0   ;;  %s868_s10 = smov 0  }
   0x9   :  { %s870_s11 = smov 0   ;;  %s872_s12 = smov 0  }
   0xa   :  { %s874_s13 = smov 0   ;;  %s876_s14 = smov 0  }
   0xb   :  { %s878_s15 = smov 0   ;;  %s880_s16 = smov 0  }
   0xc   :  { %s882_s17 = smov 0   ;;  %s884_s18 = smov 0  }
   0xd   :  { %s886_s19 = smov 0   ;;  %s888_s20 = smov 0  }
   0xe   :  { %s890_s21 = smov 0   ;;  %s892_s22 = smov 0  }
   0xf LB: > { %1192 = sst [smem:[#allocation14_spill]] %s793_s9  ;;  %s467_s23 = sadd.s32 4294967295, %s845_s22   ;;  %s845_s22 = sphi %s892_s22, %s21_s22   ;;  %s841_s21 = sphi %s890_s21, %s1234_s21   ;;  %s837_s20 = sphi %s888_s20, %s1233_s20   ;;  %s833_s19 = sphi %s886_s19, %s1232_s19   ;;  %s829_s18 = sphi %s884_s18, %s1231_s18   ;;  %s825_s17 = sphi %s882_s17, %s1220_s17   ;;  %s821_s16 = sphi %s880_s16, %s1230_s16   ;;  %s817_s15 = sphi %s878_s15, %s1229_s15   ;;  %s813_s14 = sphi %s876_s14, %s1228_s14   ;;  %s809_s13 = sphi %s874_s13, %s1227_s13   ;;  %s805_s12 = sphi %s872_s12, %s1226_s12   ;;  %s801_s11 = sphi %s870_s11, %s1225_s11   ;;  %s797_s10 = sphi %s868_s10, %s1224_s10   ;;  %s793_s9 = sphi %s866_s9, %s1223_s9  }
  0x10   : > { %1193 = sst [smem:[#allocation15_spill]] %s801_s11  ;;  %s468_s24 = sadd.s32 4294967294, %s845_s22  }
  0x11   : > { %1194 = sst [smem:[#allocation16_spill]] %s825_s17  ;;  %s30_s25 = sadd.s32 1, %s837_s20 }
  0x12   : > { %s33_s26 = sadd.s32 1, %s841_s21  ;;  %p31_p0 = scmp.ge.s32.totalorder %s30_s25, 6 }
  0x13   : > { %p37_p1 = scmp.lt.s32.totalorder %s837_s20, 1  ;;  %s46_s27 = sadd.s32 1, %s825_s17 }
  0x14   : > { %p53_p2 = scmp.ne.s32.totalorder %s825_s17, %s821_s16  ;;  %s1236_s25 = smov (%p31_p0, %s30_s25), 0 }
  0x15   : > { %s1238_s26 = smov (!%p31_p0, %s33_s26), %s841_s21  ;;  %p39_p4 = scmp.lt.s32.totalorder %s1236_s25, 1 }
  0x16   : > { %s948_s28 = scalar_select %p37_p1, %s837_s20, 1 }
  0x17   : > { %p35_p3 = scmp.ge.s32.totalorder %s1238_s26, 2  ;;  %p1187_p5 = scmp.eq.s32.totalorder %s845_s22, 0 }
  0x18   : > { %p59_p6 = scmp.ne.s32.totalorder %s821_s16, %s817_s15  ;;  %p970_p8 = scmp.eq.s32.totalorder %s467_s23, 0 }
  0x19   : > { %s1240_s26 = smov (%p35_p3, %s1238_s26), 0  ;;  %p963_p7 = por %p1187_p5, %p53_p2 }
  0x1a   : > { %1195 = sst [smem:[#allocation17_spill]] %s1240_s26  ;;  %s959_s30 = ssub.s32 %s841_s21, %s1240_s26 }
  0x1b   : > { %s40_s29 = scalar_select %p39_p4, %s1236_s25, 1 }
  0x1c   : > { %p104_p9 = scmp.eq.s32.totalorder %s959_s30, 0  ;;  %p978_p11 = por %p970_p8, %p59_p6 }
  0x1d   : > { %s41_s4 = ssub.s32 %s948_s28, %s40_s29  ;;  %s106_s8 = sadd.s32 1, %s801_s11 }
  0x1e   : > { %s43_s6 = sor.u32 %s959_s30, %s41_s4  ;;  %p116_p12 = scmp.ne.s32.totalorder %s801_s11, %s797_s10 }
  0x1f   : > { %p44_p10 = scmp.eq.s32.totalorder %s43_s6, 0  ;;  %p117_p13 = scmp.eq.s32.totalorder %s467_s23, 11 }
  0x20   : > { %s989_s29 = scalar_select %p104_p9, %s801_s11, %s106_s8  }
  0x21   : > { %s986_s15 = scalar_select %p44_p10, %s825_s17, %s46_s27  }
  0x22   : > { %1200 = sst [smem:[#allocation19_spill]] %s989_s29  ;;  %p122_p0 = scmp.ne.s32.totalorder %s797_s10, %s793_s9 }
  0x23   : > { %1199 = sst [smem:[#allocation18_spill]] %s986_s15  ;;  %p123_p1 = scmp.eq.s32.totalorder %s468_s24, 11 }
  0x24   : > { %p997_p2 = por %p117_p13, %p116_p12  ;;  %p1188_p3 = scmp.lt.s32.totalorder %s845_s22, 12 }
  0x25   : > { %p1002_p4 = por %p123_p1, %p122_p0  ;;  %s143_s27 = sand.u32 1, %s825_s17  }
  0x26   : > { %s1201_s4 = scalar_select %p997_p2, 1, 0 }
  0x27   : > { %s1203_s6 = scalar_select %p1002_p4, 1, 0 }
  0x28   : > { %1202 = sst [smem:[#allocation20_spill]] %s1201_s4  ;;  %s473_s8 = sshll.u32 %s143_s27, 3 }
  0x29   : > { %s474_s26 = sshll.u32 %s948_s28, 1  ;;  %s147_s29 = scalar_lea.vmem [#allocation5], %s473_s8 }
  0x2a   : > { %s154_s15 = sadd.s32 %s841_s21, %s474_s26  ;;  %s158_s23 = sshll.u32 %s147_s29, 4  ;;  %s159_s23 = int_to_ptr.vmem [resolvable:$true] %s158_s23 }
  0x2b   : > { %s475_s11 = sshll.u32 %s154_s15, 7  ;;  %s1204_s0 = sld [smem:[#allocation21_spill]] }
  0x2c   : > { %p1016_p6 = pnand %p1188_p3, %p963_p7  ;;  %p480_p9 = scmp.ge.s32.totalorder %s845_s22, 1 }
  0x2d   : > { %p186_p10 = scmp.lt.s32.totalorder %s845_s22, 13  ;;  %s144_s17 = scalar_lea.sflag [#allocation6], %s143_s27 }
  0x2e   : > { %p643_p12 = pneg %p1016_p6  ;;  %s654_s26 = scalar_lea.vmem %s159_s23, 128 }
  0x2f   : > { %p655_p13 = scmp.ne.s32.totalorder %s159_s23, %s654_s26  ;;  %s847_s28 = smov [#allocation5]  }
  0x30   : > { %s659_s15 = sshll.u32 %s847_s28, 4  ;;  %s660_s15 = int_to_ptr.vmem [resolvable:$false] %s659_s15 }
  0x31   : > { %s156_s24 = scalar_lea.hbm %s1204_s0, %s475_s11  ;;  %p657_p0 = pnand %p655_p13, %p643_p12 }
  0x32   : > { %s661_s2 = scalar_lea.vmem %s660_s15, 256  ;;  %p662_p5 = scmp.lt.s32.totalorder %s159_s23, %s660_s15 }
  0x33   : > { %p658_p1 = pneg %p657_p0  ;;  %p663_p4 = scmp.lt.s32.totalorder %s661_s2, %s654_s26 }
  0x35   : > { %p664_p7 = por %p663_p4, %p662_p5 }
  0x37   : > { %p665_p3 = pnand %p664_p7, %p658_p1 }
  0x39   : > { %668 = shalt.err (!%p665_p3)
}
  0x3a   : > { %506 = dma.hbm_to_vmem [thread:$0]  (!%p1016_p6), %s156_s24, 128, %s159_s23, %s144_s17  }
  0x3b   : > { %p1030_p5 = pnand %p480_p9, %p186_p10  ;;  %s469_s11 = sadd.s32 4294967294, %s837_s20 }
  0x3c   : > { %s470_s3 = sadd.s32 4294967294, %s1236_s25  ;;  %p70_p3 = scmp.gt.s32.totalorder %s469_s11, 0 }
  0x3d   : > { %p73_p4 = scmp.gt.s32.totalorder %s470_s3, 0  ;;  %p87_p12 = scmp.ne.s32.totalorder %s813_s14, %s809_s13 }
  0x3e   : > { %s1242_s11 = smov (!%p70_p3, %s469_s11), 0  ;;  %s80_s29 = sadd.s32 1, %s813_s14 }
  0x3f   : > { %s1244_s3 = smov (!%p73_p4, %s470_s3), 0  ;;  %p93_p13 = scmp.ne.s32.totalorder %s809_s13, %s805_s12 }
  0x40   : > { %s75_s17 = ssub.s32 %s1242_s11, %s1244_s3  ;;  %s165_s4 = sand.u32 1, %s813_s14  }
  0x41   : > { %s77_s27 = sor.u32 %s75_s17, %s959_s30  ;;  %p1045_p6 = por %p93_p13, %p970_p8 }
  0x42   : > { %p78_p9 = scmp.eq.s32.totalorder %s77_s27, 0  ;;  %p1208_p10 = scmp.eq.s32.totalorder %s845_s22, 0 }
  0x43   : > { %s476_s23 = sshll.u32 %s165_s4, 3  ;;  %s478_s24 = sshll.u32 %s1242_s11, 1 }
  0x44   : > { %p89_p0 = por %p87_p12, %p1208_p10  ;;  %s177_s28 = sadd.s32 %s841_s21, %s478_s24 }
  0x45   : > { %s1052_s26 = scalar_select %p78_p9, %s813_s14, %s80_s29  }
  0x46   : > { %s479_s15 = sshll.u32 %s177_s28, 7  ;;  %s169_s2 = scalar_lea.vmem [#allocation8], %s476_s23 }
  0x47   : > { %s181_s12 = sshll.u32 %s169_s2, 4  ;;  %s179_s30 = scalar_lea.hbm %s1178_s1, %s479_s15  ;;  %s182_s12 = int_to_ptr.vmem [resolvable:$true] %s181_s12 }
  0x48   : > { %p1209_p8 = scmp.lt.s32.totalorder %s845_s22, 12  ;;  %s166_s17 = scalar_lea.sflag [#allocation9], %s165_s4 }
  0x49   : > { %s682_s11 = scalar_lea.vmem %s182_s12, 128  ;;  %s848_s29 = smov [#allocation8]  }
  0x4a   : > { %p1060_p1 = pnand %p1209_p8, %p89_p0  ;;  %p683_p3 = scmp.ne.s32.totalorder %s182_s12, %s682_s11 }
  0x4b   : > { %s687_s27 = sshll.u32 %s848_s29, 4  ;;  %s688_s27 = int_to_ptr.vmem [resolvable:$false] %s687_s27 }
  0x4c   : > { %p671_p7 = pneg %p1060_p1  ;;  %s689_s23 = scalar_lea.vmem %s688_s27, 256 }
  0x4d   : > { %p690_p13 = scmp.lt.s32.totalorder %s182_s12, %s688_s27  ;;  %p691_p9 = scmp.lt.s32.totalorder %s689_s23, %s682_s11 }
  0x4e   : > { %p685_p4 = pnand %p683_p3, %p671_p7 }
  0x4f   : > { %p692_p10 = por %p691_p9, %p690_p13 }
  0x50   : > { %p686_p12 = pneg %p685_p4 }
  0x52   : > { %p693_p2 = pnand %p692_p10, %p686_p12 }
  0x54   : > { %696 = shalt.err (!%p693_p2)
}
  0x55   : > { %509 = dma.hbm_to_vmem [thread:$0]  (!%p1060_p1), %s179_s30, 128, %s182_s12, %s166_s17  }
  0x56   : > { %190 = sbr.rel (%p1030_p5) target bundleno = 1599 (0x63f), region = 28  ;;  %s192_s0 = sand.u32 (!%p1030_p5), 1, %s821_s16  }
  0x57   : > { %s1071_s4 = sshll.u32 (!%p1030_p5), %s192_s0, 3  ;;  %s193_s24 = scalar_lea.sflag (!%p1030_p5), [#allocation6], %s192_s0 }
  0x58   : > { %s196_s28 = scalar_lea.vmem (!%p1030_p5), [#allocation5], %s1071_s4 }
  0x5b   : > { %780 = dma.done.wait (%p978_p11), %s193_s24, 128  }
  0x5c   : > { %782 = vsyncadd (%p978_p11), %s193_s24, 4294967168  ;;  %s201_s15 = sand.u32 1, %s809_s13  }
  0x5d   : > { %s1079_s2 = sshll.u32 %s201_s15, 3  ;;  %s202_s9 = scalar_lea.sflag [#allocation9], %s201_s15 }
  0x5e   : > { %s205_s12 = scalar_lea.vmem [#allocation8], %s1079_s2 }
  0x5f   : > { %784 = dma.done.wait (%p1045_p6), %s202_s9, 128  }
  0x60   : > { %786 = vsyncadd (%p1045_p6), %s202_s9, 4294967168  ;;  %s228_s3 = sand.u32 1, %s797_s10   ;;  %p484_p11 = scmp.ne.s32.totalorder %s829_s18, 0 }
  0x61   : > { %s1089_s30 = sshll.u32 %s228_s3, 3 }
  0x62   : > { %s230_s7 = scalar_lea.vmem [#allocation10], %s1089_s30  ;;  %239 = sbr.rel (%p484_p11) target bundleno = 415 (0x19f), region = 40 }
  0x67   : > { %v242_v0 = vld [vmem:[%s196_s28] sm:$0xff]  ;;  %vm240_vm0 = vcmask 7168   ;;  %v849_v6 = vmov 0.0  }
  0x68   : > { %243 = vmax.xlane.f32.xlu0 %v242_v0  ;;  %241 = vst.msk [vmem:[#allocation4] sm:$0xff] %vm240_vm0, %v849_v6 }
  0xf1   : > { %v244_v1 = vpop.xlane.xlu0 %243 }
  0xf2   : > { %v245_v2 = vsub.f32 %v242_v0, %v244_v1 }
  0xf4   : > { %v246_v3 = vmul.f32 14.285714, %v245_v2 }
  0xf6   : > { %v247_v4 = vmul.f32 1.442695, %v246_v3 }
  0xf8   : > { %629 = vpow2.f32 %v247_v4 }
 0x105   : > { %v630_v5 = vpop.eup %629 }
 0x106   : > { %249 = vst [vmem:[#allocation2] sm:$0xff] %v630_v5  ;;  %250 = vadd.xlane.f32.xlu0 %v630_v5 }
 0x18f   : > { %v251_v7 = vpop.xlane.xlu0 %250 }
 0x190   : > { %631 = vrcp.f32 %v251_v7 }
 0x19d   : > { %v632_v8 = vpop.eup %631 }
 0x19e   : > { %254 = vst.msk [vmem:[#allocation3] sm:$0xff] %vm240_vm0, %v632_v8 }
 0x19f PF: > { %p485_p2 = scmp.ne.s32.totalorder %s829_s18, 1 }
 0x1a1   : > { %258 = sbr.rel (%p485_p2) target bundleno = 734 (0x2de), region = 44 }
 0x1a6   : > { %v259_v9 = vld [vmem:[%s196_s28] sm:$0xff]  ;;  %vm273_vm1 = vcmask 7168  }
 0x1a7   : > { %260 = vmax.xlane.f32.xlu0 %v259_v9 }
 0x230   : > { %v261_v10 = vpop.xlane.xlu0 %260 }
 0x231   : > { %v262_v11 = vsub.f32 %v259_v9, %v261_v10 }
 0x233   : > { %v263_v12 = vmul.f32 14.285714, %v262_v11 }
 0x235   : > { %v264_v13 = vmul.f32 1.442695, %v263_v12 }
 0x237   : > { %633 = vpow2.f32 %v264_v13 }
 0x244   : > { %v634_v14 = vpop.eup %633 }
 0x245   : > { %267 = vst [vmem:[#allocation2 + $0x8] sm:$0xff] %v634_v14  ;;  %268 = vadd.xlane.f32.xlu0 %v634_v14 }
 0x2ce   : > { %v269_v15 = vpop.xlane.xlu0 %268 }
 0x2cf   : > { %635 = vrcp.f32 %v269_v15 }
 0x2dc   : > { %v636_v16 = vpop.eup %635 }
 0x2dd   : > { %274 = vst.msk [vmem:[#allocation3 + $0x8] sm:$0xff] %vm273_vm1, %v636_v16 }
 0x2de PF: > { %p486_p5 = scmp.lt.s32.totalorder %s829_s18, 2 }
 0x2df   : > { %s487_s8 = sadd.s32 (!%p486_p5), 4294967294, %s829_s18 }
 0x2e0   : > { %278 = sbr.rel (%p486_p5) target bundleno = 1362 (0x552), region = 48  ;;  %p488_p6 = scmp.eq.s32.totalorder (!%p486_p5), %s487_s8, 0 }
 0x2e5   : > { %v280_v17 = vld [vmem:[%s205_s12] sm:$0xff] }
 0x2e6   : > { %281 = vmax.xlane.f32.xlu0 %v280_v17 }
 0x36f   : > { %v282_v18 = vpop.xlane.xlu0 %281 }
 0x370   : > { %v283_v19 = vsub.f32 %v280_v17, %v282_v18  ;;  %v291_v25 = vmul.f32 10.0, %v282_v18 }
 0x372   : > { %v284_v20 = vmul.f32 10.0, %v283_v19 }
 0x374   : > { %v285_v21 = vmul.f32 1.442695, %v284_v20 }
 0x376   : > { %637 = vpow2.f32 %v285_v21 }
 0x383   : > { %v638_v22 = vpop.eup %637 }
 0x384   : > { %287 = vadd.xlane.f32.xlu0 %v638_v22 }
 0x40d   : > { %v288_v23 = vpop.xlane.xlu0 %287 }
 0x40e   : > { %639 = vlog2.f32 %v288_v23 }
 0x41a   : > { %296 = sbr.rel (%p488_p6) target bundleno = 1205 (0x4b5), region = 52 }
 0x41b   : > { %v640_v24 = vpop.eup %639 }
 0x41c   : > { %v290_v26 = vmul.f32 0.6931472, %v640_v24 }
 0x41e   : > { %v292_v27 = vadd.f32 %v291_v25, %v290_v26 }
 0x41f   : > { %v297_v28 = vld [vmem:[#allocation2] sm:$0xff]  ;;  %v302_v30 = vld [vmem:[#allocation3] sm:$0xff]  ;;  %vm307_vm2 = vcmask 7168  }
 0x420   : > { %v298_v29 = vmul.f32 %v297_v28, %v280_v17  ;;  %v301_v34 = vld [vmem:[#allocation4] sm:$0xff] }
 0x422   : > { %299 = vadd.xlane.f32.xlu0 %v298_v29 }
 0x4ab   : > { %v300_v31 = vpop.xlane.xlu0 %299 }
 0x4ac   : > { %v303_v32 = vmul.f32 %v302_v30, %v300_v31 }
 0x4ae   : > { %v304_v33 = vmul.f32 10.0, %v303_v32 }
 0x4b0   : > { %v305_v35 = vsub.f32 %v292_v27, %v304_v33 }
 0x4b2   : > { %v306_v36 = vadd.f32 %v305_v35, %v301_v34 }
 0x4b4   : > { %308 = vst.msk [vmem:[#allocation4] sm:$0xff] %vm307_vm2, %v306_v36 }
 0x4b5 PF: > { %p489_p0 = scmp.eq.s32.totalorder %s487_s8, 1 }
 0x4b7   : > { %312 = sbr.rel (%p489_p0) target bundleno = 1362 (0x552), region = 56 }
 0x4bc   : > { %v314_v37 = vld [vmem:[#allocation2 + $0x8] sm:$0xff]  ;;  %v320_v39 = vld [vmem:[#allocation3 + $0x8] sm:$0xff]  ;;  %v318_v43 = vld [vmem:[#allocation4] sm:$0xff]  ;;  %vm325_vm3 = vcmask 7168  }
 0x4bd   : > { %v315_v38 = vmul.f32 %v314_v37, %v280_v17 }
 0x4bf   : > { %316 = vadd.xlane.f32.xlu0 %v315_v38 }
 0x548   : > { %v317_v40 = vpop.xlane.xlu0 %316 }
 0x549   : > { %v321_v41 = vmul.f32 %v320_v39, %v317_v40 }
 0x54b   : > { %v322_v42 = vmul.f32 10.0, %v321_v41 }
 0x54d   : > { %v323_v44 = vsub.f32 %v292_v27, %v322_v42 }
 0x54f   : > { %v324_v45 = vadd.f32 %v323_v44, %v318_v43 }
 0x551   : > { %326 = vst.msk [vmem:[#allocation4] sm:$0xff] %vm325_vm3, %v324_v45 }
 0x552 PF: > { %p490_p8 = scmp.ne.s32.totalorder %s829_s18, 5 }
 0x554   : > { %330 = sbr.rel (%p490_p8) target bundleno = 1573 (0x625), region = 60 }
 0x559   : > { %v331_v46 = vld [vmem:[#allocation4] sm:$0xff]  ;;  %vm332_vm4 = vcmask 7168  }
 0x55a   : > { %v333_v47 = vsel %vm332_vm4, %v331_v46, 0.0 }
 0x55b   : > { %334 = vadd.xlane.f32.xlu0 %v333_v47 }
 0x5e4   : > { %v335_v48 = vpop.xlane.xlu0 %334 }
 0x5e5   : > { %v336_v49 = vrot.slane %v335_v48, 4 }
 0x5e7   : > { %v337_v50 = vadd.f32 %v336_v49, %v335_v48 }
 0x5e9   : > { %v338_v51 = vrot.slane %v337_v50, 2 }
 0x5eb   : > { %v339_v52 = vadd.f32 %v338_v51, %v337_v50 }
 0x5ed   : > { %v340_v53 = vrot.slane %v339_v52, 1 }
 0x5ef   : > { %v341_v54 = vadd.f32 %v340_v53, %v339_v52 }
 0x5f1   : > { %495 = vpush %v341_v54 }
 0x622   : > { %s496_s5 = spop %495 }
 0x623   : > { %v343_v55 = vstv %s496_s5 }
 0x624   : > { %344 = vst [vmem:[%s230_s7] sm:$0xff] %v343_v55 }
 0x625 PF: > { %s1211_s18 = sld [smem:[#allocation20_spill]]  ;;  %s492_s17 = sshll.u32 %s833_s19, 7 }
 0x626   : > { %s1212_s27 = sld [smem:[#allocation22_spill]]  ;;  %s359_s0 = sshll.u32 %s230_s7, 4  ;;  %s360_s0 = int_to_ptr.vmem [resolvable:$true] %s359_s0 }
 0x627   : > { %s346_s4 = scalar_lea.sflag [#allocation7], %s228_s3  ;;  %s697_s24 = scalar_lea.vmem %s360_s0, 128 }
 0x628   : > { %p698_p1 = scmp.ne.s32.totalorder %s360_s0, %s697_s24  ;;  %s850_s28 = smov [#allocation10]  }
 0x629   : > { %s701_s15 = sshll.u32 %s850_s28, 4  ;;  %s702_s15 = int_to_ptr.vmem [resolvable:$false] %s701_s15 }
 0x62a   : > { %s703_s2 = scalar_lea.vmem %s702_s15, 256  ;;  %p704_p12 = scmp.lt.s32.totalorder %s360_s0, %s702_s15 }
 0x62b   : > { %p1213_p7 = scmp.ne.s32.totalorder %s1211_s18, 0  ;;  %p705_p13 = scmp.lt.s32.totalorder %s703_s2, %s697_s24 }
 0x62c   : > { %s357_s23 = scalar_lea.hbm %s1212_s27, %s492_s17 }
 0x62d   : > { %p699_p3 = pnand %p698_p1, %p1213_p7  ;;  %p706_p9 = por %p705_p13, %p704_p12 }
 0x62f   : > { %p700_p4 = pneg %p699_p3 }
 0x631   : > { %p707_p10 = pnand %p706_p9, %p700_p4 }
 0x633   : > { %710 = shalt.err (!%p707_p10)
}
 0x634   : > { %s711_s19 = scalar_lea.hbm %s357_s23, 128  ;;  %s715_s3 = scalar_lea.hbm %s1212_s27, 256 }
 0x635   : > { %p712_p11 = scmp.ne.s32.totalorder %s357_s23, %s711_s19  ;;  %p716_p6 = scmp.lt.s32.totalorder %s357_s23, %s1212_s27 }
 0x636   : > { %p717_p0 = scmp.lt.s32.totalorder %s715_s3, %s711_s19 }
 0x637   : > { %p713_p2 = pnand %p712_p11, %p1213_p7 }
 0x638   : > { %p718_p8 = por %p717_p0, %p716_p6 }
 0x639   : > { %p714_p5 = pneg %p713_p2 }
 0x63b   : > { %p719_p1 = pnand %p718_p8, %p714_p5 }
 0x63d   : > { %722 = shalt.err (!%p719_p1)
}
 0x63e   : > { %501 = dma.vmem_to_hbm [thread:$0]  (%p1213_p7), %s360_s0, 128, %s357_s23, %s346_s4  }
 0x63f PF: > { %s1214_s8 = sld [smem:[#allocation14_spill]]  ;;  %p515_p3 = scmp.ge.s32.totalorder %s845_s22, 2 }
 0x640   : > { %p1215_p4 = scmp.ne.s32.totalorder %s1203_s6, 0 }
 0x642   : > { %p511_p12 = pnand %p515_p3, %p1215_p4 }
 0x644   : > { %p512_p13 = pneg %p511_p12 }
 0x645   : > { %s371_s5 = sand.u32 1, %s1214_s8  }
 0x646   : > { %s372_s17 = scalar_lea.sflag [#allocation7], %s371_s5 }
 0x647   : > { %788 = dma.done.wait (%p512_p13), %s372_s17, 128  }
 0x648   : > { %790 = vsyncadd (%p512_p13), %s372_s17, 4294967168  ;;  %s21_s22 = sadd.s32 1, %s845_s22   ;;  %s1217_s18 = sld [smem:[#allocation15_spill]] }
 0x649   : > { %p1130_p9 = scmp.ge.s32.totalorder %s21_s22, 14   ;;  %s1218_s29 = sld [smem:[#allocation19_spill]] }
 0x64a   : > { %s1219_s23 = sld [smem:[#allocation16_spill]]  ;;  %s1223_s9 = smov %s797_s10 }
 0x64b   : > { %s1220_s17 = sld [smem:[#allocation18_spill]]  ;;  %s1226_s12 = smov %s809_s13 }
 0x64c   : > { %s1221_s6 = sld [smem:[#allocation17_spill]]  ;;  %s1227_s13 = smov %s813_s14 }
 0x64d   : > { %s1228_s14 = smov %s1052_s26  ;;  %s1229_s15 = smov %s821_s16 }
 0x64e   : > { %s1224_s10 = smov %s1217_s18  ;;  %s1231_s18 = smov %s837_s20 }
 0x64f   : > { %s1225_s11 = smov %s1218_s29  ;;  %s1232_s19 = smov %s841_s21 }
 0x650   : > { %s1230_s16 = smov %s1219_s23  ;;  %s1233_s20 = smov %s1236_s25 }
 0x651   :  { %20 = sbr.rel (!%p1130_p9) target bundleno = 15 (0xf), region = 114 }
 0x652   : > { %s1234_s21 = smov %s1221_s6 }
 0x656   :  { %377 = vsyncpa [#allocation6], 1 }
 0x657   :  { %379 = vsyncpa [#allocation6 + $0x1], 1 }
 0x658   :  { %380 = vsyncpa [#allocation9], 1 }
 0x659   :  { %382 = vsyncpa [#allocation9 + $0x1], 1 }
 0x65a   :  { %383 = vsyncpa [#allocation7], 1 }
 0x65b   :  { %385 = vsyncpa [#allocation7 + $0x1], 1 }

</bundles_post_ra>
